<compile_context>
chip_gen: v6e
topology: v6e:2x2x1
jax: 0.10.0
libtpu: 0.0.40
codegen_flags: <defaults>
</compile_context>

<pallas_src>
import functools

import jax
import jax.numpy as jnp
from jax.experimental import pallas as pl
from jax.experimental.pallas import tpu as pltpu


def _choose_block_rows(batch, feat, itemsize, bytes_budget=24 * 1024 * 1024):
    # 2 inputs x 2 pipeline buffers x TB x D x itemsize under the budget.
    tb = bytes_budget // (2 * 2 * feat * itemsize)
    tb = (tb // 16) * 16                    # multiple of 16 (bf16-friendly)
    tb = max(16, min(4096, tb))
    if batch >= 8:
        tb = min(tb, (batch // 8) * 8)      # never exceed the array's rows
    else:
        tb = 8
    return max(8, tb)


def _infonce_kernel(o1_ref, o2_ref, lab_ref, out_ref, *, inv_temp, batch, tile_b):
    pid = pl.program_id(0)

    o1 = o1_ref[...].astype(jnp.float32)      # (TB, D)
    o2 = o2_ref[...].astype(jnp.float32)      # (TB, D)
    y = lab_ref[...].astype(jnp.float32)      # (TB, 1)

    # Row reductions instead of full-width normalizing divides.
    s11 = jnp.sum(o1 * o1, axis=1, keepdims=True)   # (TB, 1)
    s22 = jnp.sum(o2 * o2, axis=1, keepdims=True)   # (TB, 1)
    s12 = jnp.sum(o1 * o2, axis=1, keepdims=True)   # (TB, 1)

    # F.normalize clamp: max(||x||, eps) with eps=1e-12  ==  sqrt(max(s, eps^2)),
    # fused into a single EUP rsqrt.
    eps2 = jnp.float32(1e-24)
    sim = s12 * jax.lax.rsqrt(jnp.maximum(s11, eps2) * jnp.maximum(s22, eps2))

    # logits = sim / temperature  ->  sim * (1/temperature)
    z = sim * jnp.float32(inv_temp)

    # BCEWithLogitsLoss, numerically stable form.
    bce = jnp.maximum(z, 0.0) - z * y + jnp.log1p(jnp.exp(-jnp.abs(z)))

    # Mask out-of-range rows of the ragged last tile (their content is
    # unspecified, possibly NaN; the select discards them before the sum).
    row = pid * tile_b + jax.lax.broadcasted_iota(jnp.int32, bce.shape, 0)
    bce = jnp.where(row < batch, bce, 0.0)

    # Per-tile partial sum, written as a lane-dense (1, 8, 128) block so the
    # grid axis can be "parallel" (no shared accumulator).
    out_ref[...] = jnp.broadcast_to(jnp.sum(bce), (1, 8, 128))


def infonce_loss(output1, output2, labels, temperature=0.1, block_rows=None):
    """output1, output2: (B, D); labels: (B,) -> scalar loss."""
    B, D = output1.shape
    labels = labels.reshape(B, 1)

    # Only pad when the batch is smaller than one sublane tile (tiny copy).
    if B < 8:
        pad = 8 - B
        output1 = jnp.pad(output1, ((0, pad), (0, 0)))
        output2 = jnp.pad(output2, ((0, pad), (0, 0)))
        labels = jnp.pad(labels, ((0, pad), (0, 0)))
        b_rows = 8
    else:
        b_rows = B

    itemsize = jnp.dtype(output1.dtype).itemsize
    if block_rows is None:
        TB = _choose_block_rows(b_rows, D, itemsize)
    else:
        TB = max(8, (int(block_rows) // 8) * 8)
        if b_rows >= 8:
            TB = min(TB, (b_rows // 8) * 8)

    grid = pl.cdiv(b_rows, TB)

    # Double-buffered input traffic plus headroom; capped below v7x's 64 MiB.
    vmem_limit = int(min(48 << 20, max(32 << 20, 2 * 2 * TB * D * itemsize + (8 << 20))))

    kernel = functools.partial(
        _infonce_kernel,
        inv_temp=1.0 / float(temperature),
        batch=B,
        tile_b=TB,
    )

    partials = pl.pallas_call(
        kernel,
        out_shape=jax.ShapeDtypeStruct((grid, 8, 128), jnp.float32),
        grid_spec=pltpu.PrefetchScalarGridSpec(
            num_scalar_prefetch=0,
            grid=(grid,),
            in_specs=[
                pl.BlockSpec((TB, D), lambda i: (i, 0)),
                pl.BlockSpec((TB, D), lambda i: (i, 0)),
                pl.BlockSpec((TB, 1), lambda i: (i, 0)),
            ],
            out_specs=pl.BlockSpec((1, 8, 128), lambda i: (i, 0, 0)),
        ),
        compiler_params=pltpu.CompilerParams(
            dimension_semantics=("parallel",),   # independent per-tile partials
            vmem_limit_bytes=vmem_limit,
        ),
    )(output1, output2, labels)

    # Final reduction + mean in the wrapper (tiny: grid scalars).
    return jnp.sum(partials[:, 0, 0]) * (1.0 / float(B))


def _reference(output1, output2, labels, temperature=0.1):
    eps = 1e-12
    o1 = output1.astype(jnp.float32)
    o2 = output2.astype(jnp.float32)
    n1 = jnp.maximum(jnp.linalg.norm(o1, axis=1, keepdims=True), eps)
    n2 = jnp.maximum(jnp.linalg.norm(o2, axis=1, keepdims=True), eps)
    sim = jnp.sum((o1 / n1) * (o2 / n2), axis=1)
    z = sim / temperature
    y = labels.astype(jnp.float32)
    bce = jnp.maximum(z, 0.0) - z * y + jnp.log1p(jnp.exp(-jnp.abs(z)))
    return jnp.mean(bce)


if __name__ == "__main__":
    key = jax.random.PRNGKey(0)
    k1, k2, k3 = jax.random.split(key, 3)

    # Non-multiple batch exercises the ragged last tile + in-kernel row mask;
    # small block_rows exercises the multi-tile parallel-partials path (grid=4).
    B, D = 100, 256
    output1 = jax.random.normal(k1, (B, D), dtype=jnp.float32)
    output2 = jax.random.normal(k2, (B, D), dtype=jnp.float32)
    labels = jax.random.bernoulli(k3, 0.5, (B,)).astype(jnp.float32)

    loss = infonce_loss(output1, output2, labels, temperature=0.1, block_rows=32)
    loss = jax.block_until_ready(loss)
    ref = _reference(output1, output2, labels, temperature=0.1)
    assert jnp.allclose(loss, ref, atol=1e-5, rtol=1e-5), (loss, ref)

    # Auto-tiled single-step path (small shape, TB == B).
    loss2 = jax.block_until_ready(
        infonce_loss(output1[:8, :128], output2[:8, :128], labels[:8]))
    ref2 = _reference(output1[:8, :128], output2[:8, :128], labels[:8])
    assert jnp.allclose(loss2, ref2, atol=1e-5, rtol=1e-5), (loss2, ref2)

    print("KERNEL_OK")
</pallas_src>

<mosaic_0001>
module attributes {stable_mosaic.version = 11 : i64} {
  func.func @_infonce_kernel(%arg0: i32, %arg1: memref<32x256xf32, #tpu.memory_space<vmem>>, %arg2: memref<32x256xf32, #tpu.memory_space<vmem>>, %arg3: memref<32x1xf32, #tpu.memory_space<vmem>>, %arg4: memref<1x8x128xf32, #tpu.memory_space<vmem>>) attributes {dimension_semantics = [#tpu.dimension_semantics<parallel>], iteration_bounds = array<i64: 4>, scalar_prefetch = 0 : i64, scratch_operands = 0 : i64, tpu.core_type = #tpu.core_type<tc>, window_params = [{transform_indices = @transform_0, window_bounds = array<i64: 32, 256>}, {transform_indices = @transform_1, window_bounds = array<i64: 32, 256>}, {transform_indices = @transform_2, window_bounds = array<i64: 32, 1>}, {transform_indices = @transform_3, window_bounds = array<i64: 1, 8, 128>}]} {
    %c0 = arith.constant 0 : index
    %c0_0 = arith.constant 0 : index
    %0 = vector.load %arg1[%c0, %c0_0] : memref<32x256xf32, #tpu.memory_space<vmem>>, vector<32x256xf32>
    %c0_1 = arith.constant 0 : index
    %c0_2 = arith.constant 0 : index
    %1 = vector.load %arg2[%c0_1, %c0_2] : memref<32x256xf32, #tpu.memory_space<vmem>>, vector<32x256xf32>
    %c0_3 = arith.constant 0 : index
    %c0_4 = arith.constant 0 : index
    %2 = vector.load %arg3[%c0_3, %c0_4] : memref<32x1xf32, #tpu.memory_space<vmem>>, vector<32x1xf32>
    %3 = arith.mulf %0, %0 : vector<32x256xf32>
    %cst = arith.constant dense<0.000000e+00> : vector<32xf32>
    %4 = vector.multi_reduction <add>, %3, %cst [1] : vector<32x256xf32> to vector<32xf32>
    %5 = vector.shape_cast %4 : vector<32xf32> to vector<32x1xf32>
    %6 = arith.mulf %1, %1 : vector<32x256xf32>
    %cst_5 = arith.constant dense<0.000000e+00> : vector<32xf32>
    %7 = vector.multi_reduction <add>, %6, %cst_5 [1] : vector<32x256xf32> to vector<32xf32>
    %8 = vector.shape_cast %7 : vector<32xf32> to vector<32x1xf32>
    %9 = arith.mulf %0, %1 : vector<32x256xf32>
    %cst_6 = arith.constant dense<0.000000e+00> : vector<32xf32>
    %10 = vector.multi_reduction <add>, %9, %cst_6 [1] : vector<32x256xf32> to vector<32xf32>
    %11 = vector.shape_cast %10 : vector<32xf32> to vector<32x1xf32>
    %cst_7 = arith.constant 1.000000e-24 : f32
    %12 = vector.broadcast %cst_7 : f32 to vector<32x1xf32>
    %13 = arith.maximumf %5, %12 : vector<32x1xf32>
    %cst_8 = arith.constant 1.000000e-24 : f32
    %14 = vector.broadcast %cst_8 : f32 to vector<32x1xf32>
    %15 = arith.maximumf %8, %14 : vector<32x1xf32>
    %16 = arith.mulf %13, %15 : vector<32x1xf32>
    %17 = math.rsqrt %16 : vector<32x1xf32>
    %18 = arith.mulf %11, %17 : vector<32x1xf32>
    %cst_9 = arith.constant 1.000000e+01 : f32
    %19 = vector.broadcast %cst_9 : f32 to vector<32x1xf32>
    %20 = arith.mulf %18, %19 : vector<32x1xf32>
    %cst_10 = arith.constant 0.000000e+00 : f32
    %21 = vector.broadcast %cst_10 : f32 to vector<32x1xf32>
    %22 = arith.maximumf %20, %21 : vector<32x1xf32>
    %23 = arith.mulf %20, %2 : vector<32x1xf32>
    %24 = arith.subf %22, %23 : vector<32x1xf32>
    %25 = math.absf %20 : vector<32x1xf32>
    %cst_11 = arith.constant 0.000000e+00 : f32
    %26 = vector.broadcast %cst_11 : f32 to vector<32x1xf32>
    %27 = arith.subf %26, %25 : vector<32x1xf32>
    %28 = math.exp %27 : vector<32x1xf32>
    %29 = math.log1p %28 : vector<32x1xf32>
    %30 = arith.addf %24, %29 : vector<32x1xf32>
    %c32_i32 = arith.constant 32 : i32
    %31 = arith.muli %arg0, %c32_i32 : i32
    %32 = tpu.iota {dimensions = array<i32: 0>} : vector<32x1xi32>
    %33 = vector.broadcast %31 : i32 to vector<32x1xi32>
    %34 = arith.addi %33, %32 : vector<32x1xi32>
    %c100_i32 = arith.constant 100 : i32
    %35 = vector.broadcast %c100_i32 : i32 to vector<32x1xi32>
    %36 = arith.cmpi slt, %34, %35 : vector<32x1xi32>
    %cst_12 = arith.constant 0.000000e+00 : f32
    %37 = vector.broadcast %cst_12 : f32 to vector<32x1xf32>
    %38 = arith.select %36, %30, %37 : vector<32x1xi1>, vector<32x1xf32>
    %39 = vector.shape_cast %38 : vector<32x1xf32> to vector<1x32x1xf32>
    %cst_13 = arith.constant dense<0.000000e+00> : vector<1xf32>
    %40 = vector.multi_reduction <add>, %39, %cst_13 [1, 2] : vector<1x32x1xf32> to vector<1xf32>
    %41 = vector.shape_cast %40 : vector<1xf32> to vector<1x1x1xf32>
    %42 = vector.extract %41[0, 0, 0] : f32 from vector<1x1x1xf32>
    %43 = vector.broadcast %42 : f32 to vector<1x8x128xf32>
    %c0_14 = arith.constant 0 : index
    %c0_15 = arith.constant 0 : index
    %c0_16 = arith.constant 0 : index
    %44 = vector.load %arg4[%c0_14, %c0_15, %c0_16] : memref<1x8x128xf32, #tpu.memory_space<vmem>>, vector<1x8x128xf32>
    tpu.vector_store %arg4[%c0_14, %c0_15, %c0_16], %43 {strides = array<i32>} : memref<1x8x128xf32, #tpu.memory_space<vmem>>, vector<1x8x128xf32>,
    return
  }
  func.func @transform_0(%arg0: i32) -> (i32, i32) {
    %c0_i32 = arith.constant 0 : i32
    %c0_i32_0 = arith.constant 0 : i32
    return %arg0, %c0_i32 : i32, i32
  }
  func.func @transform_1(%arg0: i32) -> (i32, i32) {
    %c0_i32 = arith.constant 0 : i32
    %c0_i32_0 = arith.constant 0 : i32
    return %arg0, %c0_i32 : i32, i32
  }
  func.func @transform_2(%arg0: i32) -> (i32, i32) {
    %c0_i32 = arith.constant 0 : i32
    %c0_i32_0 = arith.constant 0 : i32
    return %arg0, %c0_i32 : i32, i32
  }
  func.func @transform_3(%arg0: i32) -> (i32, i32, i32) {
    %c0_i32 = arith.constant 0 : i32
    %c0_i32_0 = arith.constant 0 : i32
    %c0_i32_1 = arith.constant 0 : i32
    return %arg0, %c0_i32, %c0_i32_0 : i32, i32, i32
  }
}

</mosaic_0001>

<bundles_post_ra>
// kernel: tpu_custom_call.1
= control target key start
LH: loop header
LB: loop body
LE: loop exit
PB: predicated region body
PF: predicated region fallthrough
CT: control target
= control target key end

     0   :  { %8 = vsyncpa [#allocation3], 0  ;;  %s1154_s0 = inlined_call_operand.hbm [shape: f32[100,256], index: 0, kind: input, shape index: {}]   ;;  %s1155_s1 = inlined_call_operand.hbm [shape: f32[100,256], index: 1, kind: input, shape index: {}]   ;;  %s1156_s2 = inlined_call_operand.vmem [shape: f32[100,1], index: 2, kind: input, shape index: {}]   ;;  %s1157_s3 = inlined_call_operand.hbm [shape: f32[4,8,128], index: 3, kind: output, shape index: {}]  }
   0x1   :  { %10 = vsyncpa [#allocation3 + $0x1], 0 }
   0x2   :  { %11 = vsyncpa [#allocation6], 0 }
   0x3   :  { %13 = vsyncpa [#allocation6 + $0x1], 0 }
   0x4   :  { %14 = vsyncpa [#allocation4], 0 }
   0x5   :  { %16 = vsyncpa [#allocation4 + $0x1], 0  ;;  %s886_s12 = smov 0   ;;  %s888_s13 = smov 0  }
   0x6   :  { %s890_s14 = smov 0   ;;  %s892_s15 = smov 0  }
   0x7 LB: > { %s907_s16 = sadd.s32 4294967295, %s857_s15   ;;  %s628_s17 = sadd.s32 4294967294, %s857_s15   ;;  %s857_s15 = sphi %s892_s15, %s1170_s15   ;;  %s853_s14 = sphi %s890_s14, %s1169_s14   ;;  %s849_s13 = sphi %s888_s13, %s1168_s13   ;;  %s845_s12 = sphi %s886_s12, %s1167_s12  }
   0x8   : > { %s911_s18 = sadd.s32 1, %s857_s15   ;;  %s29_s19 = sadd.s32 1, %s853_s14 }
   0x9   : > { %s26_s20 = ssub.s32 %s857_s15, %s911_s18  ;;  %p36_p0 = scmp.ne.s32.totalorder %s853_s14, %s849_s13 }
   0xa   : > { %p27_p1 = scmp.eq.s32.totalorder %s26_s20, 0  ;;  %p37_p2 = scmp.eq.s32.totalorder %s857_s15, 0 }
   0xb   : > { %p42_p3 = scmp.ne.s32.totalorder %s849_s13, %s845_s12  ;;  %p43_p4 = scmp.eq.s32.totalorder %s907_s16, 0 }
   0xc   : > { %s923_s21 = scalar_select %p27_p1, %s853_s14, %s29_s19  }
   0xd   : > { %p925_p5 = por %p37_p2, %p36_p0  ;;  %p929_p6 = por %p43_p4, %p42_p3 }
   0xe   : > { %p118_p7 = scmp.eq.s32.totalorder %s907_s16, 3  ;;  %p124_p8 = scmp.eq.s32.totalorder %s628_s17, 3 }
   0xf   : > { %p630_p11 = scmp.ge.s32.totalorder %s857_s15, 4 }
  0x10   : > { %p934_p9 = por %p118_p7, %p36_p0  ;;  %p938_p10 = por %p124_p8, %p42_p3 }
  0x11   : > { %140 = sbr.rel (%p630_p11) target bundleno = 86 (0x56), region = 16 }
  0x12   : > { %s1161_s24 = scalar_select %p934_p9, 1, 0 }
  0x13   : > { %s1162_s25 = scalar_select %p938_p10, 1, 0 }
  0x16   : > { %143 = sbr.rel (!%p925_p5) target bundleno = 54 (0x36), region = 20  ;;  %s144_s26 = sand.u32 (%p925_p5), 1, %s853_s14  }
  0x17   : > { %s632_s27 = sshll.u32 (%p925_p5), %s857_s15, 2  ;;  %s631_s28 = sshll.u32 (%p925_p5), %s144_s26, 6 }
  0x18   : > { %s150_s29 = ssub.s32 (%p925_p5), 13, %s632_s27  ;;  %s950_s5 = scalar_lea.sflag (%p925_p5), [#allocation3], %s144_s26 }
  0x19   : > { %p151_p12 = scmp.lt.s32.totalorder (%p925_p5), %s150_s29, 4  ;;  %s148_s6 = scalar_lea.vmem (%p925_p5), [#allocation2], %s631_s28 }
  0x1b   : > { %s1172_s29 = smov (!%p151_p12, %s150_s29), 4 }
  0x1c   : > { %s947_s30 = sshll.u32 %s1172_s29, 8 }
  0x1d   : > { %s156_s4 = ssub.s32 1024, %s947_s30 }
  0x1e   : > { %157 = vsyncadd %s950_s5, %s156_s4  ;;  %p635_p13 = scmp.ne.s32.totalorder %s947_s30, 0  ;;  %s662_s7 = sshll.u32 %s857_s15, 10 }
  0x1f   : > { %s958_s10 = scalar_lea.hbm %s1154_s0, %s662_s7  ;;  %s163_s11 = sshll.u32 %s148_s6, 4  ;;  %s960_s11 = int_to_ptr.vmem [resolvable:$true] %s163_s11 }
  0x20   : > { %s737_s17 = scalar_lea.hbm %s958_s10, %s947_s30  ;;  %s741_s26 = scalar_lea.hbm %s1154_s0, 3328 }
  0x21   : > { %p738_p0 = scmp.ne.s32.totalorder %s958_s10, %s737_s17  ;;  %p742_p3 = scmp.lt.s32.totalorder %s958_s10, %s1154_s0 }
  0x22   : > { %p743_p4 = scmp.lt.s32.totalorder %s741_s26, %s737_s17 }
  0x23   : > { %p739_p1 = pnand %p738_p0, %p635_p13 }
  0x24   : > { %p744_p7 = por %p743_p4, %p742_p3 }
  0x25   : > { %p740_p2 = pneg %p739_p1 }
  0x27   : > { %p745_p8 = pnand %p744_p7, %p740_p2 }
  0x29   : > { %748 = shalt.err (!%p745_p8)
}
  0x2a   : > { %s749_s29 = scalar_lea.vmem %s960_s11, %s947_s30  ;;  %s859_s4 = smov [#allocation2]  }
  0x2b   : > { %p750_p11 = scmp.ne.s32.totalorder %s960_s11, %s749_s29  ;;  %s753_s6 = sshll.u32 %s859_s4, 4  ;;  %s754_s6 = int_to_ptr.vmem [resolvable:$false] %s753_s6 }
  0x2c   : > { %s755_s7 = scalar_lea.vmem %s754_s6, 2048  ;;  %p756_p1 = scmp.lt.s32.totalorder %s960_s11, %s754_s6 }
  0x2d   : > { %p751_p12 = pnand %p750_p11, %p635_p13  ;;  %p757_p10 = scmp.lt.s32.totalorder %s755_s7, %s749_s29 }
  0x2f   : > { %p752_p0 = pneg %p751_p12  ;;  %p758_p9 = por %p757_p10, %p756_p1 }
  0x31   : > { %p759_p3 = pnand %p758_p9, %p752_p0 }
  0x33   : > { %762 = shalt.err (!%p759_p3)
}
  0x34   : > { %s860_s8 = smov 256   ;;  %s861_s9 = smov 16  }
  0x35   : > { %169 = dma.hbm_to_vmem [thread:$0]  (%p635_p13), %s958_s10, %s947_s30, %s960_s11, %s950_s5, %s860_s8, %s860_s8, %s861_s9  }
  0x36 PF: > { %172 = sbr.rel (!%p925_p5) target bundleno = 86 (0x56), region = 24  ;;  %s173_s17 = sand.u32 (%p925_p5), 1, %s853_s14  }
  0x37   : > { %s641_s19 = sshll.u32 (%p925_p5), %s857_s15, 2  ;;  %s640_s20 = sshll.u32 (%p925_p5), %s173_s17, 6 }
  0x38   : > { %s179_s26 = ssub.s32 (%p925_p5), 13, %s641_s19  ;;  %s993_s29 = scalar_lea.sflag (%p925_p5), [#allocation6], %s173_s17 }
  0x39   : > { %p180_p9 = scmp.lt.s32.totalorder (%p925_p5), %s179_s26, 4  ;;  %s177_s30 = scalar_lea.vmem (%p925_p5), [#allocation5], %s640_s20 }
  0x3b   : > { %s1174_s26 = smov (!%p180_p9, %s179_s26), 4 }
  0x3c   : > { %s990_s27 = sshll.u32 %s1174_s26, 8 }
  0x3d   : > { %s185_s28 = ssub.s32 1024, %s990_s27 }
  0x3e   : > { %186 = vsyncadd %s993_s29, %s185_s28  ;;  %p644_p5 = scmp.ne.s32.totalorder %s990_s27, 0  ;;  %s665_s22 = sshll.u32 %s857_s15, 10 }
  0x3f   : > { %s1001_s11 = scalar_lea.hbm %s1155_s1, %s665_s22  ;;  %s192_s4 = sshll.u32 %s177_s30, 4  ;;  %s1003_s4 = int_to_ptr.vmem [resolvable:$true] %s192_s4 }
  0x40   : > { %s763_s6 = scalar_lea.hbm %s1001_s11, %s990_s27  ;;  %s767_s9 = scalar_lea.hbm %s1155_s1, 3328 }
  0x41   : > { %p764_p10 = scmp.ne.s32.totalorder %s1001_s11, %s763_s6  ;;  %p768_p4 = scmp.lt.s32.totalorder %s1001_s11, %s1155_s1 }
  0x42   : > { %p769_p7 = scmp.lt.s32.totalorder %s767_s9, %s763_s6 }
  0x43   : > { %p765_p13 = pnand %p764_p10, %p644_p5 }
  0x44   : > { %p770_p8 = por %p769_p7, %p768_p4 }
  0x45   : > { %p766_p2 = pneg %p765_p13 }
  0x47   : > { %p771_p11 = pnand %p770_p8, %p766_p2 }
  0x49   : > { %774 = shalt.err (!%p771_p11)
}
  0x4a   : > { %s775_s20 = scalar_lea.vmem %s1003_s4, %s990_s27  ;;  %s862_s26 = smov [#allocation5]  }
  0x4b   : > { %p776_p12 = scmp.ne.s32.totalorder %s1003_s4, %s775_s20  ;;  %s779_s28 = sshll.u32 %s862_s26, 4  ;;  %s780_s28 = int_to_ptr.vmem [resolvable:$false] %s779_s28 }
  0x4c   : > { %s781_s30 = scalar_lea.vmem %s780_s28, 2048  ;;  %p782_p3 = scmp.lt.s32.totalorder %s1003_s4, %s780_s28 }
  0x4d   : > { %p777_p0 = pnand %p776_p12, %p644_p5  ;;  %p783_p9 = scmp.lt.s32.totalorder %s781_s30, %s775_s20 }
  0x4f   : > { %p778_p1 = pneg %p777_p0  ;;  %p784_p10 = por %p783_p9, %p782_p3 }
  0x51   : > { %p785_p13 = pnand %p784_p10, %p778_p1 }
  0x53   : > { %788 = shalt.err (!%p785_p13)
}
  0x54   : > { %s863_s22 = smov 256   ;;  %s864_s5 = smov 16  }
  0x55   : > { %198 = dma.hbm_to_vmem [thread:$0]  (%p644_p5), %s1001_s11, %s990_s27, %s1003_s4, %s993_s29, %s863_s22, %s863_s22, %s864_s5  }
  0x56 PF: > { %p649_p2 = scmp.ge.s32.totalorder %s857_s15, 1  ;;  %p217_p4 = scmp.lt.s32.totalorder %s857_s15, 5 }
  0x58   : > { %p218_p7 = pnand %p649_p2, %p217_p4 }
  0x59   : > { %s1032_s10 = sand.u32 (!%p218_p7), 1, %s849_s13  }
  0x5a   : > { %221 = sbr.rel (%p218_p7) target bundleno = 535 (0x217), region = 32  ;;  %s650_s6 = sshll.u32 (!%p218_p7), %s1032_s10, 6 }
  0x5b   : > { %s224_s7 = scalar_lea.sflag (!%p218_p7), [#allocation3], %s1032_s10  ;;  %s1036_s8 = scalar_lea.vmem (!%p218_p7), [#allocation2], %s650_s6 }
  0x5f   : > { %832 = dma.done.wait (%p929_p6), %s224_s7, 1024  }
  0x60   : > { %834 = vsyncadd (%p929_p6), %s224_s7, 4294966272  ;;  %s233_s27 = scalar_lea.sflag [#allocation6], %s1032_s10  ;;  %s1043_s29 = scalar_lea.vmem [#allocation5], %s650_s6 }
  0x61   : > { %836 = dma.done.wait (%p929_p6), %s233_s27, 1024  }
  0x62   : > { %838 = vsyncadd (%p929_p6), %s233_s27, 4294966272  ;;  %v307_v0 = vld [vmem:[%s1043_s29] sm:$0xff]  ;;  %v308_v1 = vld [vmem:[%s1043_s29 + $0x8] sm:$0xff]  ;;  %s653_s23 = sshll.u32 %s907_s16, 2  ;;  %s655_s19 = sshll.u32 %s907_s16, 5  ;;  %vm490_vm6 = vcmask 7168  }
  0x63   : > { %v299_v2 = vld [vmem:[%s1036_s8] sm:$0xff]  ;;  %v339_v3 = vmul.f32 %v307_v0, %v307_v0  ;;  %v340_v4 = vmul.f32 %v308_v1, %v308_v1  ;;  %v300_v5 = vld [vmem:[%s1036_s8 + $0x8] sm:$0xff]  ;;  %v309_v7 = vld [vmem:[%s1043_s29 + $0x10] sm:$0xff]  ;;  %p290_p6 = scmp.lt.s32.totalorder %s653_s23, 12  ;;  %s652_s20 = sshll.u32 %s1032_s10, 3 }
  0x64   : > { %v319_v6 = vmul.f32 %v299_v2, %v299_v2  ;;  %v310_v8 = vld [vmem:[%s1043_s29 + $0x18] sm:$0xff]  ;;  %v320_v9 = vmul.f32 %v300_v5, %v300_v5  ;;  %v341_v10 = vmul.f32 %v309_v7, %v309_v7  ;;  %v301_v12 = vld [vmem:[%s1036_s8 + $0x10] sm:$0xff]  ;;  %v311_v14 = vld [vmem:[%s1043_s29 + $0x20] sm:$0xff]  ;;  %v359_v42 = vmul.f32 %v307_v0, %v299_v2  ;;  %s272_s26 = scalar_lea.vmem [#allocation7], %s652_s20  ;;  %s657_s30 = sshll.u32 %s907_s16, 7 }
  0x65   : > { %v342_v11 = vmul.f32 %v310_v8, %v310_v8  ;;  %v302_v13 = vld [vmem:[%s1036_s8 + $0x18] sm:$0xff]  ;;  %v347_v15 = vadd.f32 %v340_v4, %v339_v3  ;;  %v321_v16 = vmul.f32 %v301_v12, %v301_v12  ;;  %v312_v18 = vld [vmem:[%s1043_s29 + $0x28] sm:$0xff]  ;;  %v303_v19 = vld [vmem:[%s1036_s8 + $0x20] sm:$0xff]  ;;  %v343_v23 = vmul.f32 %v311_v14, %v311_v14  ;;  %s1176_s23 = smov (!%p290_p6, %s653_s23), 12  ;;  %s523_s28 = sshll.u32 %s272_s26, 4  ;;  %s1115_s28 = int_to_ptr.vmem [resolvable:$true] %s523_s28 }
  0x66   : > { %v322_v17 = vmul.f32 %v302_v13, %v302_v13  ;;  %v304_v20 = vld [vmem:[%s1036_s8 + $0x28] sm:$0xff]  ;;  %v327_v21 = vadd.f32 %v320_v9, %v319_v6  ;;  %v344_v24 = vmul.f32 %v312_v18, %v312_v18  ;;  %v323_v26 = vmul.f32 %v303_v19, %v303_v19  ;;  %v313_v28 = vld [vmem:[%s1043_s29 + $0x30] sm:$0xff]  ;;  %v314_v29 = vld [vmem:[%s1043_s29 + $0x38] sm:$0xff]  ;;  %s654_s11 = sshll.u32 %s1176_s23, 3  ;;  %s521_s7 = scalar_lea.hbm %s1157_s3, %s657_s30 }
  0x67   : > { %348 = vadd.xlane.f32.xlu1 %v347_v15  ;;  %v350_v22 = vadd.f32 %v342_v11, %v341_v10  ;;  %v324_v27 = vmul.f32 %v304_v20, %v304_v20  ;;  %v305_v30 = vld [vmem:[%s1036_s8 + $0x30] sm:$0xff]  ;;  %v306_v31 = vld [vmem:[%s1036_s8 + $0x38] sm:$0xff]  ;;  %v345_v33 = vmul.f32 %v313_v28, %v313_v28  ;;  %v346_v34 = vmul.f32 %v314_v29, %v314_v29  ;;  %s1081_s17 = scalar_lea.vmem %s1156_s2, %s654_s11  ;;  %s510_s8 = scalar_lea.sflag [#allocation4], %s1032_s10 }
  0x68   : > { %328 = vadd.xlane.f32.xlu0 %v327_v21  ;;  %v330_v25 = vadd.f32 %v322_v17, %v321_v16  ;;  %v353_v32 = vadd.f32 %v344_v24, %v343_v23  ;;  %v325_v36 = vmul.f32 %v305_v30, %v305_v30  ;;  %v326_v37 = vmul.f32 %v306_v31, %v306_v31  ;;  %s789_s27 = scalar_lea.vmem %s1115_s28, 128  ;;  %p1165_p8 = scmp.ne.s32.totalorder %s1161_s24, 0 }
  0x69   : > { %v333_v35 = vadd.f32 %v324_v27, %v323_v26  ;;  %v356_v38 = vadd.f32 %v346_v34, %v345_v33  ;;  %v361_v39 = vmul.f32 %v309_v7, %v301_v12  ;;  %v362_v40 = vmul.f32 %v310_v8, %v302_v13  ;;  %p790_p5 = scmp.ne.s32.totalorder %s1115_s28, %s789_s27  ;;  %s865_s29 = smov [#allocation7]  }
  0x6a   : > { %v336_v41 = vadd.f32 %v326_v37, %v325_v36  ;;  %v360_v43 = vmul.f32 %v308_v1, %v300_v5  ;;  %v365_v45 = vmul.f32 %v313_v28, %v305_v30  ;;  %v366_v46 = vmul.f32 %v314_v29, %v306_v31  ;;  %s793_s16 = sshll.u32 %s865_s29, 4  ;;  %s794_s16 = int_to_ptr.vmem [resolvable:$false] %s793_s16 }
  0x6b   : > { %351 = vadd.xlane.f32.xlu1 %v350_v22  ;;  %v370_v44 = vadd.f32 %v362_v40, %v361_v39  ;;  %v363_v48 = vmul.f32 %v311_v14, %v303_v19  ;;  %v364_v49 = vmul.f32 %v312_v18, %v304_v20  ;;  %v472_v40 = vlaneseq  ;;  %p791_p11 = pnand %p790_p5, %p1165_p8  ;;  %s795_s23 = scalar_lea.vmem %s794_s16, 256 }
  0x6c   : > { %331 = vadd.xlane.f32.xlu0 %v330_v25  ;;  %v367_v47 = vadd.f32 %v360_v43, %v359_v42  ;;  %v376_v50 = vadd.f32 %v366_v46, %v365_v45  ;;  %p796_p0 = scmp.lt.s32.totalorder %s1115_s28, %s794_s16  ;;  %p797_p1 = scmp.lt.s32.totalorder %s795_s23, %s789_s27 }
  0x6d   : > { %v373_v51 = vadd.f32 %v364_v49, %v363_v48  ;;  %v473_v43 = vshrl.u32 %v472_v40, 7  ;;  %v315_v49 = vld [vmem:[%s1081_s17] sm:$0xff]  ;;  %p792_p12 = pneg %p791_p11 }
  0x6e   : > { %p798_p3 = por %p797_p1, %p796_p0 }
  0x6f   : > { %354 = vadd.xlane.f32.xlu1 %v353_v32  ;;  %v474_v46 = vadd.s32 8, %v473_v43 }
  0x70   : > { %334 = vadd.xlane.f32.xlu0 %v333_v35  ;;  %p799_p9 = pnand %p798_p3, %p792_p12 }
  0x73   : > { %357 = vadd.xlane.f32.xlu1 %v356_v38 }
  0x74   : > { %337 = vadd.xlane.f32.xlu0 %v336_v41 }
  0x77   : > { %371 = vadd.xlane.f32.xlu1 %v370_v44 }
  0x78   : > { %368 = vadd.xlane.f32.xlu0 %v367_v47 }
  0x7b   : > { %377 = vadd.xlane.f32.xlu1 %v376_v50  ;;  %v316_v50 = vld [vmem:[%s1081_s17 + $0x8] sm:$0xff] }
  0x7c   : > { %374 = vadd.xlane.f32.xlu0 %v373_v51 }
  0xf0   : > { %v349_v52 = vpop.xlane.xlu1 %348 }
  0xf1   : > { %v383_v53 = vmax.f32 %v349_v52, 1e-24  ;;  %v329_v54 = vpop.xlane.xlu0 %328  ;;  %v477_v52 = vstv %s655_s19 }
  0xf2   : > { %v379_v55 = vmax.f32 %v329_v54, 1e-24 }
  0xf4   : > { %v387_v56 = vmul.f32 %v383_v53, %v379_v55  ;;  %v352_v57 = vpop.xlane.xlu1 %351  ;;  %v479_v55 = vadd.s32 %v477_v52, %v474_v46 }
  0xf5   : > { %v384_v58 = vmax.f32 %v352_v57, 1e-24  ;;  %v332_v59 = vpop.xlane.xlu0 %331 }
  0xf6   : > { %713 = vrsqrt.f32 %v387_v56  ;;  %v380_v60 = vmax.f32 %v332_v59, 1e-24  ;;  %vm483_vm1 = vcmp.lt.s32.totalorder %v479_v55, 100 }
  0xf8   : > { %v388_v61 = vmul.f32 %v384_v58, %v380_v60  ;;  %v355_v62 = vpop.xlane.xlu1 %354 }
  0xf9   : > { %v385_v63 = vmax.f32 %v355_v62, 1e-24  ;;  %v335_v0 = vpop.xlane.xlu0 %334 }
  0xfa   : > { %715 = vrsqrt.f32 %v388_v61  ;;  %v381_v1 = vmax.f32 %v335_v0, 1e-24 }
  0xfc   : > { %v389_v2 = vmul.f32 %v385_v63, %v381_v1  ;;  %v358_v3 = vpop.xlane.xlu1 %357  ;;  %v478_v1 = vadd.s32 %v477_v52, %v473_v43 }
  0xfd   : > { %v386_v4 = vmax.f32 %v358_v3, 1e-24  ;;  %v338_v5 = vpop.xlane.xlu0 %337  ;;  %v317_v3 = vld [vmem:[%s1081_s17 + $0x10] sm:$0xff] }
  0xfe   : > { %717 = vrsqrt.f32 %v389_v2  ;;  %v382_v6 = vmax.f32 %v338_v5, 1e-24  ;;  %v475_v5 = vadd.s32 16, %v473_v43  ;;  %vm482_vm3 = vcmp.lt.s32.totalorder %v478_v1, 100 }
 0x100   : > { %v390_v7 = vmul.f32 %v386_v4, %v382_v6  ;;  %v372_v11 = vpop.xlane.xlu1 %371  ;;  %v476_v6 = vadd.s32 24, %v473_v43 }
 0x101   : > { %v369_v8 = vpop.xlane.xlu0 %368 }
 0x102   : > { %719 = vrsqrt.f32 %v390_v7 }
 0x103   : > { %v714_v9 = vpop.eup %713 }
 0x104   : > { %v395_v10 = vmul.f32 %v714_v9, %v369_v8  ;;  %v378_v23 = vpop.xlane.xlu1 %377 }
 0x105   : > { %v375_v18 = vpop.xlane.xlu0 %374 }
 0x106   : > { %v1065_v12 = vmul.f32 10.0, %v395_v10 }
 0x107   : > { %v716_v13 = vpop.eup %715 }
 0x108   : > { %v415_v14 = vand.u32 2147483647, %v1065_v12  ;;  %v396_v15 = vmul.f32 %v716_v13, %v372_v11  ;;  %v403_v56 = vmax.f32 %v1065_v12, 0.0  ;;  %v407_v57 = vmul.f32 %v1065_v12, %v315_v49  ;;  %v318_v13 = vld [vmem:[%s1081_s17 + $0x18] sm:$0xff] }
 0x10a   : > { %v419_v16 = vsub.f32 0.0, %v415_v14  ;;  %v1068_v17 = vmul.f32 10.0, %v396_v15  ;;  %v411_v11 = vsub.f32 %v403_v56, %v407_v57 }
 0x10b   : > { %v718_v19 = vpop.eup %717 }
 0x10c   : > { %v423_v20 = vmul.f32 1.442695, %v419_v16  ;;  %v416_v21 = vand.u32 2147483647, %v1068_v17  ;;  %v397_v22 = vmul.f32 %v718_v19, %v375_v18  ;;  %v404_v60 = vmax.f32 %v1068_v17, 0.0 }
 0x10d   : > { %v408_v61 = vmul.f32 %v1068_v17, %v316_v50 }
 0x10e   : > { %721 = vpow2.f32 %v423_v20  ;;  %v420_v24 = vsub.f32 0.0, %v416_v21  ;;  %v1071_v26 = vmul.f32 10.0, %v397_v22  ;;  %v480_v21 = vadd.s32 %v477_v52, %v475_v5 }
 0x10f   : > { %v720_v25 = vpop.eup %719  ;;  %v412_v12 = vsub.f32 %v404_v60, %v408_v61 }
 0x110   : > { %v425_v27 = vmul.f32 1.442695, %v420_v24  ;;  %v398_v28 = vmul.f32 %v720_v25, %v378_v23  ;;  %v417_v29 = vand.u32 2147483647, %v1071_v26  ;;  %v405_v15 = vmax.f32 %v1071_v26, 0.0 }
 0x111   : > { %v409_v16 = vmul.f32 %v1071_v26, %v317_v3  ;;  %v481_v26 = vadd.s32 %v477_v52, %v476_v6  ;;  %vm484_vm5 = vcmp.lt.s32.totalorder %v480_v21, 100 }
 0x112   : > { %723 = vpow2.f32 %v425_v27  ;;  %v1074_v30 = vmul.f32 10.0, %v398_v28  ;;  %v421_v31 = vsub.f32 0.0, %v417_v29 }
 0x113   : > { %vm485_vm8 = vcmp.lt.s32.totalorder %v481_v26, 100 }
 0x114   : > { %v418_v32 = vand.u32 2147483647, %v1074_v30  ;;  %v427_v33 = vmul.f32 1.442695, %v421_v31  ;;  %v406_v23 = vmax.f32 %v1074_v30, 0.0  ;;  %v410_v24 = vmul.f32 %v1074_v30, %v318_v13 }
 0x116   : > { %v422_v34 = vsub.f32 0.0, %v418_v32  ;;  %725 = vpow2.f32 %v427_v33  ;;  %v413_v32 = vsub.f32 %v405_v15, %v409_v16 }
 0x118   : > { %v429_v35 = vmul.f32 1.442695, %v422_v34 }
 0x11a   : > { %727 = vpow2.f32 %v429_v35 }
 0x11b   : > { %v722_v36 = vpop.eup %721 }
 0x11c   : > { %v431_v37 = vadd.f32 1.0, %v722_v36  ;;  %v434_v44 = vmul.f32 -0.5, %v722_v36  ;;  %v437_v54 = vand.u32 2147483647, %v722_v36 }
 0x11e   : > { %729 = vlog2.f32 %v431_v37  ;;  %v435_v51 = vadd.f32 1.0, %v434_v44  ;;  %vm1094_vm0 = vcmp.lt.f32.partialorder %v437_v54, 0.0004427343 }
 0x11f   : > { %v724_v38 = vpop.eup %723 }
 0x120   : > { %v440_v39 = vadd.f32 1.0, %v724_v38  ;;  %v443_v47 = vmul.f32 -0.5, %v724_v38  ;;  %v446_v62 = vand.u32 2147483647, %v724_v38  ;;  %v436_v0 = vmul.f32 %v722_v36, %v435_v51 }
 0x122   : > { %731 = vlog2.f32 %v440_v39  ;;  %v444_v59 = vadd.f32 1.0, %v443_v47  ;;  %vm447_vm2 = vcmp.lt.f32.partialorder %v446_v62, 0.0004427343  ;;  %v414_v39 = vsub.f32 %v406_v23, %v410_v24 }
 0x123   : > { %v726_v41 = vpop.eup %725 }
 0x124   : > { %v449_v42 = vadd.f32 1.0, %v726_v41  ;;  %v452_v63 = vmul.f32 -0.5, %v726_v41  ;;  %v445_v9 = vmul.f32 %v724_v38, %v444_v59  ;;  %v455_v18 = vand.u32 2147483647, %v726_v41 }
 0x126   : > { %733 = vlog2.f32 %v449_v42  ;;  %v453_v14 = vadd.f32 1.0, %v452_v63  ;;  %vm456_vm4 = vcmp.lt.f32.partialorder %v455_v18, 0.0004427343 }
 0x127   : > { %v1083_v45 = vpop.eup %727 }
 0x128   : > { %v458_v48 = vadd.f32 1.0, %v1083_v45  ;;  %v461_v10 = vmul.f32 -0.5, %v1083_v45  ;;  %v454_v28 = vmul.f32 %v726_v41, %v453_v14  ;;  %v464_v29 = vand.u32 2147483647, %v1083_v45 }
 0x12a   : > { %735 = vlog2.f32 %v458_v48  ;;  %v462_v25 = vadd.f32 1.0, %v461_v10  ;;  %vm465_vm7 = vcmp.lt.f32.partialorder %v464_v29, 0.0004427343 }
 0x12b   : > { %v730_v53 = vpop.eup %729 }
 0x12c   : > { %v433_v58 = vmul.f32 0.6931472, %v730_v53  ;;  %v463_v37 = vmul.f32 %v1083_v45, %v462_v25 }
 0x12e   : > { %v439_v7 = vsel %vm1094_vm0, %v436_v0, %v433_v58 }
 0x12f   : > { %v732_v2 = vpop.eup %731  ;;  %v467_v19 = vadd.f32 %v439_v7, %v411_v11 }
 0x130   : > { %v442_v8 = vmul.f32 0.6931472, %v732_v2 }
 0x131   : > { %v486_v35 = vsel %vm482_vm3, %v467_v19, 0.0 }
 0x132   : > { %v448_v17 = vsel %vm447_vm2, %v445_v9, %v442_v8  ;;  %v491_v42 = vsel %vm490_vm6, %v486_v35, 0.0 }
 0x133   : > { %v468_v20 = vadd.f32 %v448_v17, %v412_v12  ;;  %v734_v22 = vpop.eup %733 }
 0x134   : > { %v451_v27 = vmul.f32 0.6931472, %v734_v22 }
 0x135   : > { %v487_v31 = vsel %vm483_vm1, %v468_v20, 0.0 }
 0x136   : > { %v457_v34 = vsel %vm456_vm4, %v454_v28, %v451_v27  ;;  %v492_v38 = vsel %vm490_vm6, %v487_v31, 0.0 }
 0x137   : > { %v736_v33 = vpop.eup %735  ;;  %v469_v30 = vadd.f32 %v457_v34, %v413_v32  ;;  %v493_v44 = vadd.f32 %v492_v38, %v491_v42 }
 0x138   : > { %v460_v36 = vmul.f32 0.6931472, %v736_v33 }
 0x139   : > { %v488_v41 = vsel %vm484_vm5, %v469_v30, 0.0 }
 0x13a   : > { %v466_v40 = vsel %vm465_vm7, %v463_v37, %v460_v36  ;;  %v494_v46 = vsel %vm490_vm6, %v488_v41, 0.0 }
 0x13b   : > { %v470_v43 = vadd.f32 %v466_v40, %v414_v39  ;;  %v495_v48 = vadd.f32 %v494_v46, %v493_v44 }
 0x13d   : > { %v489_v47 = vsel %vm485_vm8, %v470_v43, 0.0 }
 0x13e   : > { %v496_v45 = vsel %vm490_vm6, %v489_v47, 0.0 }
 0x13f   : > { %v497_v49 = vadd.f32 %v496_v45, %v495_v48 }
 0x141   : > { %498 = vadd.xlane.f32.xlu0 %v497_v49 }
 0x1ca   : > { %v499_v50 = vpop.xlane.xlu0 %498 }
 0x1cb   : > { %v500_v51 = vrot.slane %v499_v50, 4 }
 0x1cd   : > { %v501_v52 = vadd.f32 %v500_v51, %v499_v50 }
 0x1cf   : > { %v502_v53 = vrot.slane %v501_v52, 2 }
 0x1d1   : > { %v503_v54 = vadd.f32 %v502_v53, %v501_v52 }
 0x1d3   : > { %v504_v55 = vrot.slane %v503_v54, 1 }
 0x1d5   : > { %v505_v56 = vadd.f32 %v504_v55, %v503_v54 }
 0x1d7   : > { %666 = vpush %v505_v56 }
 0x208   : > { %s667_s22 = spop %666 }
 0x209   : > { %v507_v57 = vstv %s667_s22 }
 0x20a   : > { %508 = vst [vmem:[%s272_s26] sm:$0xff] %v507_v57 }
 0x20b   : > { %802 = shalt.err (!%p799_p9)
}
 0x20c   : > { %s803_s11 = scalar_lea.hbm %s521_s7, 128  ;;  %s807_s9 = scalar_lea.hbm %s1157_s3, 512 }
 0x20d   : > { %p804_p10 = scmp.ne.s32.totalorder %s521_s7, %s803_s11  ;;  %p808_p4 = scmp.lt.s32.totalorder %s521_s7, %s1157_s3 }
 0x20e   : > { %p809_p7 = scmp.lt.s32.totalorder %s807_s9, %s803_s11 }
 0x20f   : > { %p805_p13 = pnand %p804_p10, %p1165_p8 }
 0x210   : > { %p810_p6 = por %p809_p7, %p808_p4 }
 0x211   : > { %p806_p2 = pneg %p805_p13 }
 0x213   : > { %p811_p5 = pnand %p810_p6, %p806_p2 }
 0x215   : > { %814 = shalt.err (!%p811_p5)
}
 0x216   : > { %670 = dma.vmem_to_hbm [thread:$0]  (%p1165_p8), %s1115_s28, 128, %s521_s7, %s510_s8  }
 0x217 PF: > { %p676_p11 = scmp.ge.s32.totalorder %s857_s15, 2  ;;  %s535_s20 = sand.u32 1, %s845_s12  }
 0x218   : > { %p1166_p12 = scmp.ne.s32.totalorder %s1162_s25, 0  ;;  %s536_s26 = scalar_lea.sflag [#allocation4], %s535_s20 }
 0x21a   : > { %p673_p0 = pnand %p676_p11, %p1166_p12 }
 0x21c   : > { %p674_p1 = pneg %p673_p0 }
 0x21e   : > { %840 = dma.done.wait (%p674_p1), %s536_s26, 128  }
 0x21f   : > { %842 = vsyncadd (%p674_p1), %s536_s26, 4294967168  ;;  %p19_p3 = scmp.ge.s32.totalorder %s911_s18, 6   ;;  %s1167_s12 = smov %s849_s13 }
 0x220   : > { %s1168_s13 = smov %s853_s14  ;;  %s1169_s14 = smov %s923_s21 }
 0x221   : > { %s1170_s15 = smov %s911_s18  ;;  %21 = sbr.rel (!%p19_p3) target bundleno = 7 (0x7), region = 93 }
 0x226   :  { %541 = vsyncpa [#allocation3], 1 }
 0x227   :  { %543 = vsyncpa [#allocation3 + $0x1], 1 }
 0x228   :  { %544 = vsyncpa [#allocation6], 1 }
 0x229   :  { %546 = vsyncpa [#allocation6 + $0x1], 1 }
 0x22a   :  { %547 = vsyncpa [#allocation4], 1 }
 0x22b   :  { %549 = vsyncpa [#allocation4 + $0x1], 1 }

</bundles_post_ra>
